<compile_context>
chip_gen: v7x
topology: tpu7x:2x2x1
jax: 0.10.0
libtpu: 0.0.40
codegen_flags: <defaults>
</compile_context>

<pallas_src>
import functools
import math

import jax
import jax.numpy as jnp
from jax.experimental import pallas as pl
from jax.experimental.pallas import tpu as pltpu


# ----------------------------------------------------------------------------
# Pallas kernels
# ----------------------------------------------------------------------------
def _ln_mm_kernel(x_ref, g_ref, b_ref, w_ref, bias_ref, o_ref, xn_ref, *, act, eps):
    """o = act(LayerNorm(x) @ W + bias).

    x:(TM,D) f32, W:(D,TN) bf16, o:(TM,TN) bf16.  LN(x) is computed once per row tile
    (grid axis j == 0) into a bf16 VMEM scratch and reused for every N tile.
    """
    @pl.when(pl.program_id(1) == 0)
    def _():
        x = x_ref[...]                                   # f32
        mu = jnp.mean(x, axis=-1, keepdims=True)
        xc = x - mu
        var = jnp.mean(xc * xc, axis=-1, keepdims=True)
        xn = xc * jax.lax.rsqrt(var + eps)
        xn = xn * g_ref[...] + b_ref[...]
        xn_ref[...] = xn.astype(jnp.bfloat16)

    y = jnp.dot(xn_ref[...], w_ref[...], preferred_element_type=jnp.float32)
    y = y + bias_ref[...]
    if act == "quick_gelu":
        y = y * (1.0 / (1.0 + jnp.exp(-1.702 * y)))      # QuickGELU
    o_ref[...] = y.astype(o_ref.dtype)


def _mm_bias_res_kernel(a_ref, w_ref, bias_ref, res_ref, o_ref, acc_ref):
    """o = A @ W + bias + residual  (K-tiled, f32 accumulator, A/W already bf16)."""
    @pl.when(pl.program_id(2) == 0)
    def _():
        acc_ref[...] = jnp.zeros_like(acc_ref)

    acc_ref[...] += jnp.dot(a_ref[...], w_ref[...],
                            preferred_element_type=jnp.float32)

    @pl.when(pl.program_id(2) == pl.num_programs(2) - 1)
    def _():
        o_ref[...] = acc_ref[...] + bias_ref[...] + res_ref[...]


def _attn_kernel(qkv_ref, *rest, n_head, d_model, has_mask):
    """Per-batch-item attention over all heads.

    qkv block: (1, L, 3*D) bf16 with PyTorch in_proj layout [q | k | v], heads contiguous
    hd-wide column groups inside each D segment; the hd**-0.5 scale is pre-folded into q.
    Output is one lane-dense (1, L, D) bf16 store.
    """
    if has_mask:
        m_ref, o_ref = rest
    else:
        (o_ref,) = rest
    hd = d_model // n_head
    qkv = qkv_ref[0]                                      # (L, 3D) bf16
    ctx = []
    for h in range(n_head):                               # static unroll over heads
        q = qkv[:, h * hd:(h + 1) * hd]
        k = qkv[:, d_model + h * hd:d_model + (h + 1) * hd]
        v = qkv[:, 2 * d_model + h * hd:2 * d_model + (h + 1) * hd]
        s = jax.lax.dot_general(q, k, (((1,), (1,)), ((), ())),
                                preferred_element_type=jnp.float32)    # (L, L) f32
        if has_mask:
            s = s + m_ref[...]                            # mask pre-clamped to finite
        s = s - jnp.max(s, axis=-1, keepdims=True)
        p = jnp.exp(s)
        p = p * pl.reciprocal(jnp.sum(p, axis=-1, keepdims=True), approx=True)
        ctx.append(jnp.dot(p.astype(jnp.bfloat16), v,
                           preferred_element_type=jnp.float32))        # (L, hd) f32
    # TODO(synk): add a flash-style KV-tile online-softmax loop once L grows beyond
    # CLIP text/ViT scale (full (L,L) scores per head live in VMEM here).
    o_ref[0] = jnp.concatenate(ctx, axis=-1).astype(jnp.bfloat16)      # lane-dense (L, D)


# ----------------------------------------------------------------------------
# Wrappers (tiling collapses to full dims at small shapes -> no padding copies)
# ----------------------------------------------------------------------------
_TM, _TN, _TK = 256, 512, 512          # VMEM-safe on v5e/v6e/v7x (bf16 MXU, f32 acc)


def _round_up(x, m):
    return (x + m - 1) // m * m


def _pad_to(arr, axis, size):
    if arr.shape[axis] == size:
        return arr
    pad = [(0, 0)] * arr.ndim
    pad[axis] = (0, size - arr.shape[axis])
    return jnp.pad(arr, pad)


def ln_matmul(x, gamma, beta, w, bias, act=None, eps=1e-5):
    """act(LayerNorm(x; gamma, beta) @ w + bias); x:(M,D) f32, w:(D,N) bf16 -> (M,N) bf16."""
    M, D = x.shape
    N = w.shape[1]
    TM = M if M <= _TM else _TM
    TN = N if N <= _TN else _TN
    Mp, Np = _round_up(M, TM), _round_up(N, TN)
    x_p = _pad_to(x, 0, Mp)
    w_p = _pad_to(w, 1, Np)
    bias_p = _pad_to(bias.reshape(1, N).astype(jnp.float32), 1, Np)
    g2 = gamma.reshape(1, D).astype(jnp.float32)
    b2 = beta.reshape(1, D).astype(jnp.float32)

    out = pl.pallas_call(
        functools.partial(_ln_mm_kernel, act=act, eps=eps),
        out_shape=jax.ShapeDtypeStruct((Mp, Np), jnp.bfloat16),
        grid=(Mp // TM, Np // TN),                        # j (axis 1) innermost
        in_specs=[
            pl.BlockSpec((TM, D), lambda i, j: (i, 0)),
            pl.BlockSpec((1, D), lambda i, j: (0, 0)),
            pl.BlockSpec((1, D), lambda i, j: (0, 0)),
            pl.BlockSpec((D, TN), lambda i, j: (0, j)),
            pl.BlockSpec((1, TN), lambda i, j: (0, j)),
        ],
        out_specs=pl.BlockSpec((TM, TN), lambda i, j: (i, j)),
        scratch_shapes=[pltpu.VMEM((TM, D), jnp.bfloat16)],   # cached LN(x) row tile
        compiler_params=pltpu.CompilerParams(
            dimension_semantics=("parallel", "arbitrary")),
    )(x_p, g2, b2, w_p, bias_p)
    if (Mp, Np) != (M, N):
        out = out[:M, :N]
    return out


def matmul_bias_res(a, w, bias, res):
    """a @ w + bias + res; a:(M,K) bf16, w:(K,N) bf16, res:(M,N) f32 -> (M,N) f32."""
    M, K = a.shape
    N = w.shape[1]
    TM = M if M <= _TM else _TM
    TN = N if N <= _TN else _TN
    TK = K if K <= _TK else _TK
    Mp, Np, Kp = _round_up(M, TM), _round_up(N, TN), _round_up(K, TK)
    a_p = _pad_to(_pad_to(a, 0, Mp), 1, Kp)
    w_p = _pad_to(_pad_to(w, 0, Kp), 1, Np)
    bias_p = _pad_to(bias.reshape(1, N).astype(jnp.float32), 1, Np)
    res_p = _pad_to(_pad_to(res, 0, Mp), 1, Np)

    out = pl.pallas_call(
        _mm_bias_res_kernel,
        out_shape=jax.ShapeDtypeStruct((Mp, Np), jnp.float32),
        grid=(Mp // TM, Np // TN, Kp // TK),
        in_specs=[
            pl.BlockSpec((TM, TK), lambda i, j, k: (i, k)),
            pl.BlockSpec((TK, TN), lambda i, j, k: (k, j)),
            pl.BlockSpec((1, TN), lambda i, j, k: (0, j)),
            pl.BlockSpec((TM, TN), lambda i, j, k: (i, j)),
        ],
        out_specs=pl.BlockSpec((TM, TN), lambda i, j, k: (i, j)),
        scratch_shapes=[pltpu.VMEM((TM, TN), jnp.float32)],
        compiler_params=pltpu.CompilerParams(
            dimension_semantics=("parallel", "parallel", "arbitrary")),
    )(a_p, w_p, bias_p, res_p)
    if (Mp, Np) != (M, N):
        out = out[:M, :N]
    return out


def attention(qkv, n_head, mask=None):
    """qkv: (B, L, 3*D) bf16 (PyTorch in_proj layout) -> ctx: (B, L, D) bf16."""
    B, L, threeD = qkv.shape
    D = threeD // 3
    has_mask = mask is not None
    in_specs = [pl.BlockSpec((1, L, threeD), lambda b: (b, 0, 0))]
    args = [qkv]
    if has_mask:
        # Clamp -inf to a large finite negative: avoids (-inf)-(-inf)=NaN for fully
        # masked rows in the max-subtracted softmax.
        mask = jnp.maximum(mask.astype(jnp.float32), jnp.float32(-1e9))
        in_specs.append(pl.BlockSpec((L, L), lambda b: (0, 0)))
        args.append(mask)
    return pl.pallas_call(
        functools.partial(_attn_kernel, n_head=n_head, d_model=D, has_mask=has_mask),
        out_shape=jax.ShapeDtypeStruct((B, L, D), jnp.bfloat16),
        grid=(B,),
        in_specs=in_specs,
        out_specs=pl.BlockSpec((1, L, D), lambda b: (b, 0, 0)),
        compiler_params=pltpu.CompilerParams(dimension_semantics=("parallel",)),
    )(*args)


# ----------------------------------------------------------------------------
# ResidualAttentionBlock forward
# ----------------------------------------------------------------------------
def residual_attention_block_forward(p, x, attn_mask=None):
    """x: (L, N, d_model) f32 (PyTorch seq-first) -> (L, N, d_model) f32."""
    L, N, D = x.shape

    # Single layout change to batch-first so per-batch-item qkv rows are contiguous.
    xb = jnp.transpose(x, (1, 0, 2))                          # (N, L, D)
    x2d = xb.reshape(N * L, D)                                # (M, D) f32 residual stream

    # ---- attention branch: x + out_proj(MHA(LN1(x))) ----
    qkv = ln_matmul(x2d, p["ln1_g"], p["ln1_b"], p["w_qkv"], p["b_qkv"])   # (M, 3D) bf16
    ctx = attention(qkv.reshape(N, L, 3 * D), n_head=p["n_head"],
                    mask=attn_mask)                                        # (N, L, D) bf16
    x1 = matmul_bias_res(ctx.reshape(N * L, D), p["w_out"], p["b_out"], x2d)  # (M, D) f32

    # ---- MLP branch: x + c_proj(QuickGELU(c_fc(LN2(x)))) ----
    hmid = ln_matmul(x1, p["ln2_g"], p["ln2_b"], p["w_fc1"], p["b_fc1"],
                     act="quick_gelu")                                     # (M, 4D) bf16
    out = matmul_bias_res(hmid, p["w_fc2"], p["b_fc2"], x1)                # (M, D) f32

    return out.reshape(N, L, D).transpose(1, 0, 2)            # back to (L, N, D)


# ----------------------------------------------------------------------------
# Parameters (deterministic synthetic, PyTorch layouts pre-folded once)
# ----------------------------------------------------------------------------
def make_params(key, d_model, n_head):
    ks = jax.random.split(key, 8)

    def lin(k, out_f, in_f):
        kw, kb = jax.random.split(k)
        w = jax.random.normal(kw, (out_f, in_f), jnp.float32) / math.sqrt(in_f)
        b = 0.02 * jax.random.normal(kb, (out_f,), jnp.float32)
        return w, b

    w_in, b_in = lin(ks[0], 3 * d_model, d_model)        # MHA in_proj  (3D, D)
    # Fold the hd**-0.5 attention scale into the q rows of in_proj (pure
    # reparameterization: PyTorch scales q after the projection; same result).
    scale = (d_model // n_head) ** -0.5
    w_in = w_in.at[:d_model, :].multiply(scale)
    b_in = b_in.at[:d_model].multiply(scale)

    w_o, b_o = lin(ks[1], d_model, d_model)              # MHA out_proj
    w_1, b_1 = lin(ks[2], 4 * d_model, d_model)          # mlp.c_fc
    w_2, b_2 = lin(ks[3], d_model, 4 * d_model)          # mlp.c_proj
    return dict(
        n_head=n_head,
        ln1_g=(1.0 + 0.1 * jax.random.normal(ks[4], (d_model,))).astype(jnp.float32),
        ln1_b=(0.1 * jax.random.normal(ks[5], (d_model,))).astype(jnp.float32),
        ln2_g=(1.0 + 0.1 * jax.random.normal(ks[6], (d_model,))).astype(jnp.float32),
        ln2_b=(0.1 * jax.random.normal(ks[7], (d_model,))).astype(jnp.float32),
        # pre-transposed to (in, out) and pre-cast to bf16 once (MXU inputs)
        w_qkv=w_in.T.astype(jnp.bfloat16), b_qkv=b_in,
        w_out=w_o.T.astype(jnp.bfloat16), b_out=b_o,
        w_fc1=w_1.T.astype(jnp.bfloat16), b_fc1=b_1,
        w_fc2=w_2.T.astype(jnp.bfloat16), b_fc2=b_2,
    )


# ----------------------------------------------------------------------------
# Pure-JAX reference (same bf16-rounded weights, f32 activations, scale pre-folded)
# ----------------------------------------------------------------------------
def reference_forward(p, x, attn_mask=None, eps=1e-5):
    L, N, D = x.shape
    h = p["n_head"]
    hd = D // h

    def ln(v, g, b):
        mu = v.mean(-1, keepdims=True)
        var = ((v - mu) ** 2).mean(-1, keepdims=True)
        return (v - mu) / jnp.sqrt(var + eps) * g + b

    f32 = lambda w: w.astype(jnp.float32)
    xl = ln(x, p["ln1_g"], p["ln1_b"])
    qkv = xl @ f32(p["w_qkv"]) + p["b_qkv"]
    q, k, v = jnp.split(qkv, 3, axis=-1)
    heads = lambda t: t.reshape(L, N * h, hd).transpose(1, 0, 2)
    q, k, v = heads(q), heads(k), heads(v)
    s = jnp.einsum("bqd,bkd->bqk", q, k)          # scale already folded into w_qkv/b_qkv
    if attn_mask is not None:
        s = s + attn_mask
    a = jax.nn.softmax(s, axis=-1)
    ctx = jnp.einsum("bqk,bkd->bqd", a, v).transpose(1, 0, 2).reshape(L, N, D)
    x1 = x + ctx @ f32(p["w_out"]) + p["b_out"]
    xl2 = ln(x1, p["ln2_g"], p["ln2_b"])
    hm = xl2 @ f32(p["w_fc1"]) + p["b_fc1"]
    hm = hm * jax.nn.sigmoid(1.702 * hm)
    return x1 + hm @ f32(p["w_fc2"]) + p["b_fc2"]


# ----------------------------------------------------------------------------
if __name__ == "__main__":
    d_model, n_head, seq_len, batch = 128, 4, 8, 2   # small, lane-friendly config

    key = jax.random.PRNGKey(0)
    pkey, xkey = jax.random.split(key)
    params = make_params(pkey, d_model, n_head)
    x = jax.random.normal(xkey, (seq_len, batch, d_model), jnp.float32)

    # No-mask path
    out = residual_attention_block_forward(params, x, attn_mask=None)
    out = jax.block_until_ready(out)
    assert out.shape == (seq_len, batch, d_model), out.shape
    assert bool(jnp.all(jnp.isfinite(out)))
    ref = reference_forward(params, x, attn_mask=None)
    err = float(jnp.max(jnp.abs(out - ref)))
    assert err < 1.5e-1, f"max abs err vs reference (no mask): {err}"

    # Causal additive-mask path (SatCLIP text transformer style)
    causal = jnp.where(jnp.tril(jnp.ones((seq_len, seq_len), bool)),
                       0.0, -jnp.inf).astype(jnp.float32)
    out_m = residual_attention_block_forward(params, x, attn_mask=causal)
    out_m = jax.block_until_ready(out_m)
    assert bool(jnp.all(jnp.isfinite(out_m)))
    ref_m = reference_forward(params, x, attn_mask=causal)
    err_m = float(jnp.max(jnp.abs(out_m - ref_m)))
    assert err_m < 1.5e-1, f"max abs err vs reference (causal mask): {err_m}"

    print("KERNEL_OK")
</pallas_src>

<mosaic_0001>
module attributes {stable_mosaic.version = 11 : i64} {
  func.func @_ln_mm_kernel(%arg0: i32, %arg1: i32, %arg2: memref<16x128xf32, #tpu.memory_space<vmem>>, %arg3: memref<1x128xf32, #tpu.memory_space<vmem>>, %arg4: memref<1x128xf32, #tpu.memory_space<vmem>>, %arg5: memref<128x384xbf16, #tpu.memory_space<vmem>>, %arg6: memref<1x384xf32, #tpu.memory_space<vmem>>, %arg7: memref<16x384xbf16, #tpu.memory_space<vmem>>, %arg8: memref<16x128xbf16, #tpu.memory_space<vmem>>) attributes {dimension_semantics = [#tpu.dimension_semantics<parallel>, #tpu.dimension_semantics<arbitrary>], iteration_bounds = array<i64: 1, 1>, scalar_prefetch = 0 : i64, scratch_operands = 1 : i64, tpu.core_type = #tpu.core_type<tc>, window_params = [{transform_indices = @transform_0, window_bounds = array<i64: 16, 128>}, {pipeline_mode = #tpu.pipeline_mode<synchronous>, transform_indices = @transform_1, window_bounds = array<i64: 1, 128>}, {pipeline_mode = #tpu.pipeline_mode<synchronous>, transform_indices = @transform_2, window_bounds = array<i64: 1, 128>}, {transform_indices = @transform_3, window_bounds = array<i64: 128, 384>}, {transform_indices = @transform_4, window_bounds = array<i64: 1, 384>}, {transform_indices = @transform_5, window_bounds = array<i64: 16, 384>}]} {
    %c0_i32 = arith.constant 0 : i32
    %0 = arith.cmpi eq, %arg1, %c0_i32 : i32
    %1 = arith.extui %0 : i1 to i32
    %c0_i32_0 = arith.constant 0 : i32
    %2 = arith.cmpi ne, %1, %c0_i32_0 : i32
    scf.if %2 {
      %c0_8 = arith.constant 0 : index
      %c0_9 = arith.constant 0 : index
      %11 = vector.load %arg2[%c0_8, %c0_9] : memref<16x128xf32, #tpu.memory_space<vmem>>, vector<16x128xf32>
      %cst_10 = arith.constant dense<0.000000e+00> : vector<16xf32>
      %12 = vector.multi_reduction <add>, %11, %cst_10 [1] : vector<16x128xf32> to vector<16xf32>
      %13 = vector.shape_cast %12 : vector<16xf32> to vector<16x1xf32>
      %cst_11 = arith.constant 1.280000e+02 : f32
      %14 = vector.broadcast %cst_11 : f32 to vector<16x1xf32>
      %15 = arith.divf %13, %14 : vector<16x1xf32>
      %16 = vector.broadcast %15 : vector<16x1xf32> to vector<16x128xf32>
      %17 = arith.subf %11, %16 : vector<16x128xf32>
      %18 = arith.mulf %17, %17 : vector<16x128xf32>
      %cst_12 = arith.constant dense<0.000000e+00> : vector<16xf32>
      %19 = vector.multi_reduction <add>, %18, %cst_12 [1] : vector<16x128xf32> to vector<16xf32>
      %20 = vector.shape_cast %19 : vector<16xf32> to vector<16x1xf32>
      %cst_13 = arith.constant 1.280000e+02 : f32
      %21 = vector.broadcast %cst_13 : f32 to vector<16x1xf32>
      %22 = arith.divf %20, %21 : vector<16x1xf32>
      %cst_14 = arith.constant 9.99999974E-6 : f32
      %23 = vector.broadcast %cst_14 : f32 to vector<16x1xf32>
      %24 = arith.addf %22, %23 : vector<16x1xf32>
      %25 = math.rsqrt %24 : vector<16x1xf32>
      %26 = vector.broadcast %25 : vector<16x1xf32> to vector<16x128xf32>
      %27 = arith.mulf %17, %26 : vector<16x128xf32>
      %c0_15 = arith.constant 0 : index
      %c0_16 = arith.constant 0 : index
      %28 = vector.load %arg3[%c0_15, %c0_16] : memref<1x128xf32, #tpu.memory_space<vmem>>, vector<1x128xf32>
      %29 = vector.broadcast %28 : vector<1x128xf32> to vector<16x128xf32>
      %30 = arith.mulf %27, %29 : vector<16x128xf32>
      %c0_17 = arith.constant 0 : index
      %c0_18 = arith.constant 0 : index
      %31 = vector.load %arg4[%c0_17, %c0_18] : memref<1x128xf32, #tpu.memory_space<vmem>>, vector<1x128xf32>
      %32 = vector.broadcast %31 : vector<1x128xf32> to vector<16x128xf32>
      %33 = arith.addf %30, %32 : vector<16x128xf32>
      %34 = arith.truncf %33 : vector<16x128xf32> to vector<16x128xbf16>
      %c0_19 = arith.constant 0 : index
      %c0_20 = arith.constant 0 : index
      %35 = vector.load %arg8[%c0_19, %c0_20] : memref<16x128xbf16, #tpu.memory_space<vmem>>, vector<16x128xbf16>
      tpu.vector_store %arg8[%c0_19, %c0_20], %34 {strides = array<i32>} : memref<16x128xbf16, #tpu.memory_space<vmem>>, vector<16x128xbf16>,
    } else {
    }
    %c0 = arith.constant 0 : index
    %c0_1 = arith.constant 0 : index
    %3 = vector.load %arg8[%c0, %c0_1] : memref<16x128xbf16, #tpu.memory_space<vmem>>, vector<16x128xbf16>
    %c0_2 = arith.constant 0 : index
    %c0_3 = arith.constant 0 : index
    %4 = vector.load %arg5[%c0_2, %c0_3] : memref<128x384xbf16, #tpu.memory_space<vmem>>, vector<128x384xbf16>
    %cst = arith.constant dense<0.000000e+00> : vector<16x384xf32>
    %5 = tpu.matmul %3, %4, %cst {dimension_numbers = #tpu.dot_dimension_numbers<[1], [0], [0], [1], [0, 0, 1, 1], [], []>} : vector<16x128xbf16>, vector<128x384xbf16>, vector<16x384xf32> -> vector<16x384xf32>
    %c0_4 = arith.constant 0 : index
    %c0_5 = arith.constant 0 : index
    %6 = vector.load %arg6[%c0_4, %c0_5] : memref<1x384xf32, #tpu.memory_space<vmem>>, vector<1x384xf32>
    %7 = vector.broadcast %6 : vector<1x384xf32> to vector<16x384xf32>
    %8 = arith.addf %5, %7 : vector<16x384xf32>
    %9 = arith.truncf %8 : vector<16x384xf32> to vector<16x384xbf16>
    %c0_6 = arith.constant 0 : index
    %c0_7 = arith.constant 0 : index
    %10 = vector.load %arg7[%c0_6, %c0_7] : memref<16x384xbf16, #tpu.memory_space<vmem>>, vector<16x384xbf16>
    tpu.vector_store %arg7[%c0_6, %c0_7], %9 {strides = array<i32>} : memref<16x384xbf16, #tpu.memory_space<vmem>>, vector<16x384xbf16>,
    return
  }
  func.func @transform_0(%arg0: i32, %arg1: i32) -> (i32, i32) {
    %c0_i32 = arith.constant 0 : i32
    %c0_i32_0 = arith.constant 0 : i32
    return %arg0, %c0_i32 : i32, i32
  }
  func.func @transform_1(%arg0: i32, %arg1: i32) -> (i32, i32) {
    %c0_i32 = arith.constant 0 : i32
    %c0_i32_0 = arith.constant 0 : i32
    %c0_i32_1 = arith.constant 0 : i32
    return %c0_i32, %c0_i32_0 : i32, i32
  }
  func.func @transform_2(%arg0: i32, %arg1: i32) -> (i32, i32) {
    %c0_i32 = arith.constant 0 : i32
    %c0_i32_0 = arith.constant 0 : i32
    %c0_i32_1 = arith.constant 0 : i32
    return %c0_i32, %c0_i32_0 : i32, i32
  }
  func.func @transform_3(%arg0: i32, %arg1: i32) -> (i32, i32) {
    %c0_i32 = arith.constant 0 : i32
    %c0_i32_0 = arith.constant 0 : i32
    return %c0_i32, %arg1 : i32, i32
  }
  func.func @transform_4(%arg0: i32, %arg1: i32) -> (i32, i32) {
    %c0_i32 = arith.constant 0 : i32
    %c0_i32_0 = arith.constant 0 : i32
    return %c0_i32, %arg1 : i32, i32
  }
  func.func @transform_5(%arg0: i32, %arg1: i32) -> (i32, i32) {
    %c0_i32 = arith.constant 0 : i32
    return %arg0, %arg1 : i32, i32
  }
}

</mosaic_0001>

<bundles_post_ra>
// kernel: tpu_custom_call.1
= control target key start
LH: loop header
LB: loop body
LE: loop exit
PB: predicated region body
PF: predicated region fallthrough
CT: control target
= control target key end

     0   :  { %10 = vsyncpa [#allocation4], 0  ;;  %s694_s0 = inlined_call_operand.hbm [shape: f32[16,128], index: 0, kind: input, shape index: {}]   ;;  %s695_s1 = inlined_call_operand.vmem [shape: f32[1,128], index: 1, kind: input, shape index: {}]   ;;  %s696_s2 = inlined_call_operand.vmem [shape: f32[1,128], index: 2, kind: input, shape index: {}]   ;;  %s697_s3 = inlined_call_operand.hbm [shape: bf16[128,384], index: 3, kind: input, shape index: {}]   ;;  %s698_s4 = inlined_call_operand.vmem [shape: f32[1,384], index: 4, kind: input, shape index: {}]   ;;  %s699_s5 = inlined_call_operand.hbm [shape: bf16[16,384], index: 5, kind: output, shape index: {}]  }
   0x1   :  { %11 = vsyncpa [#allocation7], 0 }
   0x2   :  { %12 = vsyncpa [#allocation5], 0  ;;  %s584_s18 = smov [#allocation3]   ;;  %s512_s22 = scalar_lea.hbm %s694_s0, 256 }
   0x3   :  { %s18_s19 = sshll.u32 %s584_s18, 4  ;;  %p513_p0 = scmp.ne.s32.totalorder %s694_s0, %s512_s22  ;;  %s19_s19 = int_to_ptr.vmem [resolvable:$true] %s18_s19 }
   0x4   :  { %p516_p1 = scmp.lt.u32.totalorder %s512_s22, %s694_s0 }
   0x6   :  { %p518_p2 = pnand %p516_p1, %p513_p0 }
   0x8   :  { %521 = shalt.err (!%p518_p2)
}
   0x9   :  { %s522_s27 = scalar_lea.vmem %s19_s19, 256  ;;  %p527_p4 = scmp.lt.s32.totalorder %s19_s19, %s19_s19 }
   0xa   :  { %p523_p3 = scmp.ne.s32.totalorder %s19_s19, %s522_s27  ;;  %p528_p5 = scmp.lt.s32.totalorder %s522_s27, %s522_s27 }
   0xc   :  { %p529_p6 = por %p528_p5, %p527_p4 }
   0xe   :  { %p530_p7 = pnand %p529_p6, %p523_p3 }
  0x10   :  { %533 = shalt.err (!%p530_p7)
}
  0x11   :  { %s585_s28 = smov 128   ;;  %s586_s29 = smov 8  }
  0x12   :  { %24 = dma.hbm_to_vmem [thread:$0]  %s694_s0, 256, %s19_s19, [#allocation4], %s585_s28, %s585_s28, %s586_s29  }
  0x13   :  { %s587_s7 = smov [#allocation6]   ;;  %s534_s11 = scalar_lea.hbm %s697_s3, 3072 }
  0x14   :  { %s34_s8 = sshll.u32 %s587_s7, 4  ;;  %p535_p8 = scmp.ne.s32.totalorder %s697_s3, %s534_s11  ;;  %s35_s8 = int_to_ptr.vmem [resolvable:$true] %s34_s8 }
  0x15   :  { %p538_p9 = scmp.lt.u32.totalorder %s534_s11, %s697_s3 }
  0x17   :  { %p540_p10 = pnand %p538_p9, %p535_p8 }
  0x19   :  { %543 = shalt.err (!%p540_p10)
}
  0x1a   :  { %s544_s16 = scalar_lea.vmem %s35_s8, 3072  ;;  %p549_p12 = scmp.lt.s32.totalorder %s35_s8, %s35_s8 }
  0x1b   :  { %p545_p11 = scmp.ne.s32.totalorder %s35_s8, %s544_s16  ;;  %p550_p13 = scmp.lt.s32.totalorder %s544_s16, %s544_s16 }
  0x1d   :  { %p551_p0 = por %p550_p13, %p549_p12 }
  0x1f   :  { %p552_p1 = pnand %p551_p0, %p545_p11 }
  0x21   :  { %555 = shalt.err (!%p552_p1)
}
  0x22   :  { %s588_s0 = smov 192   ;;  %s589_s17 = smov 12  }
  0x23   :  { %40 = dma.hbm_to_vmem [thread:$0]  %s697_s3, 3072, %s35_s8, [#allocation7], %s588_s0, %s588_s0, %s589_s17  }
  0x24   :  { %578 = dma.done.wait [#allocation4], 256  }
  0x25   :  { %579 = vsyncadd [#allocation4], 4294967040 }
  0x26   :  { %580 = dma.done.wait [#allocation7], 3072  }
  0x27   :  { %581 = vsyncadd [#allocation7], 4294964224  ;;  %v54_v0 = vld [vmem:[#allocation3] sm:$0xff]  ;;  %v55_v1 = vld [vmem:[#allocation3 + $0x8] sm:$0xff]  ;;  %v590_v4 = vmov 0.0   ;;  %v591_v30 = vmov 0   ;;  %v134_v53 = vlaneseq }
  0x28   :  { %56 = vadd.xlane.f32.xlu0 %v54_v0  ;;  %v476_v2 = vld [vmem:[#allocation6 + $0x4] ss:$12 sps:$4 sm:$0xff]   ;;  %v478_v3 = vld [vmem:[#allocation6] ss:$12 sps:$4 sm:$0xff]   ;;  %446 = vmatprep.subr.bf16.mxu1 %v590_v4  ;;  %v479_v5 = vld [vmem:[#allocation6 + $0x8] ss:$12 sps:$4 sm:$0xff]  }
  0x29   :  { %v480_v6 = vld [vmem:[#allocation6 + $0x1c] ss:$12 sps:$4 sm:$0xff]   ;;  %277 = vmatprep.subr.bf16.mxu0 %v476_v2  ;;  %447 = vmatpush3.bf16.msra.mxu1 %v479_v5  ;;  %v482_v15 = vld [vmem:[#allocation6 + $0x18] ss:$12 sps:$4 sm:$0xff]   ;;  %v483_v16 = vld [vmem:[#allocation6 + $0x20] ss:$12 sps:$4 sm:$0xff]  }
  0x2a   :  { %278 = vmatpush1.bf16.msra.mxu0 %v478_v3  ;;  %448 = vmatprep.subr.bf16.mxu1 %v590_v4  ;;  %v484_v17 = vld [vmem:[#allocation6 + $0x34] ss:$12 sps:$4 sm:$0xff]   ;;  %v486_v18 = vld [vmem:[#allocation6 + $0x30] ss:$12 sps:$4 sm:$0xff]   ;;  %v487_v19 = vld [vmem:[#allocation6 + $0x38] ss:$12 sps:$4 sm:$0xff]  }
  0x2b   :  { %279 = vmatprep.subr.bf16.mxu0 %v480_v6  ;;  %v488_v20 = vld [vmem:[#allocation6 + $0x4c] ss:$12 sps:$4 sm:$0xff]   ;;  %v490_v21 = vld [vmem:[#allocation6 + $0x48] ss:$12 sps:$4 sm:$0xff]   ;;  %v491_v22 = vld [vmem:[#allocation6 + $0x50] ss:$12 sps:$4 sm:$0xff]   ;;  %309 = vmatprep.mubr.bf16.mxu0 %v591_v30 }
  0x2c   :  { %58 = vadd.xlane.f32.xlu0 %v55_v1  ;;  %v492_v23 = vld [vmem:[#allocation6 + $0x64] ss:$12 sps:$4 sm:$0xff]   ;;  %v494_v24 = vld [vmem:[#allocation6 + $0x60] ss:$12 sps:$4 sm:$0xff]   ;;  %v495_v25 = vld [vmem:[#allocation6 + $0x68] ss:$12 sps:$4 sm:$0xff]  }
  0x2d   :  { %449 = vmatpush3.bf16.msra.mxu1 %v483_v16  ;;  %v496_v26 = vld [vmem:[#allocation6 + $0x7c] ss:$12 sps:$4 sm:$0xff]   ;;  %v498_v27 = vld [vmem:[#allocation6 + $0x78] ss:$12 sps:$4 sm:$0xff]   ;;  %v499_v28 = vld [vmem:[#allocation6 + $0x80] ss:$12 sps:$4 sm:$0xff]  }
  0x2e   :  { %280 = vmatpush1.bf16.msra.mxu0 %v482_v15  ;;  %450 = vmatprep.subr.bf16.mxu1 %v590_v4  ;;  %v500_v29 = vld [vmem:[#allocation6 + $0x94] ss:$12 sps:$4 sm:$0xff]   ;;  %vm592_vm0 = vmmov 0   ;;  %v502_v31 = vld [vmem:[#allocation6 + $0x90] ss:$12 sps:$4 sm:$0xff]   ;;  %v135_v54 = vshrl.u32 %v134_v53, 7 }
  0x2f   :  { %281 = vmatprep.subr.bf16.mxu0 %v484_v17  ;;  %462 = vmatprep.mubr.msk.bf16.mxu1 %vm592_vm0, %v590_v4  ;;  %v503_v32 = vld [vmem:[#allocation6 + $0x98] ss:$12 sps:$4 sm:$0xff]   ;;  %v506_v34 = vld [vmem:[#allocation6 + $0xa8] ss:$12 sps:$4 sm:$0xff]   ;;  %v507_v35 = vld [vmem:[#allocation6 + $0xb0] ss:$12 sps:$4 sm:$0xff]  }
  0x30   :  { %v504_v33 = vld [vmem:[#allocation6 + $0xac] ss:$12 sps:$4 sm:$0xff]   ;;  %v403_v44 = vld [vmem:[%s695_s1] ss:$0 sm:$0xff]  ;;  %v136_v55 = vsub.s32 0, %v135_v54  ;;  %v144_v56 = vsub.s32 2, %v135_v54 }
  0x31   :  { %451 = vmatpush3.bf16.msra.mxu1 %v487_v19  ;;  %v404_v48 = vld [vmem:[%s696_s2] ss:$0 sm:$0xff]  ;;  %v140_v58 = vsub.s32 1, %v135_v54  ;;  %s593_s2 = smov [#allocation8]  }
  0x32   :  { %282 = vmatpush1.bf16.msra.mxu0 %v486_v18  ;;  %452 = vmatprep.subr.bf16.mxu1 %v590_v4  ;;  %v132_v57 = vld [vmem:[%s698_s4] sm:$0x7]  ;;  %s390_s4 = sshll.u32 %s593_s2, 4  ;;  %s391_s4 = int_to_ptr.vmem [resolvable:$true] %s390_s4 }
  0x33   :  { %283 = vmatprep.subr.bf16.mxu0 %v488_v20  ;;  %v137_v59 = vrot.slane %v132_v57, %v136_v55  ;;  %v145_v60 = vrot.slane %v132_v57, %v144_v56  ;;  %v141_v61 = vrot.slane %v132_v57, %v140_v58  ;;  %s556_s24 = scalar_lea.vmem %s391_s4, 384  ;;  %p561_p3 = scmp.lt.s32.totalorder %s391_s4, %s391_s4 }
  0x34   :  { %p557_p2 = scmp.ne.s32.totalorder %s391_s4, %s556_s24  ;;  %p562_p4 = scmp.lt.s32.totalorder %s556_s24, %s556_s24 }
  0x35   :  { %453 = vmatpush3.bf16.msra.mxu1 %v491_v22 }
  0x36   :  { %284 = vmatpush1.bf16.msra.mxu0 %v490_v21  ;;  %454 = vmatprep.subr.bf16.mxu1 %v590_v4  ;;  %p563_p5 = por %p562_p4, %p561_p3 }
  0x37   :  { %285 = vmatprep.subr.bf16.mxu0 %v492_v23 }
  0x38   :  { %p564_p6 = pnand %p563_p5, %p557_p2 }
  0x39   :  { %455 = vmatpush3.bf16.msra.mxu1 %v495_v25 }
  0x3a   :  { %286 = vmatpush1.bf16.msra.mxu0 %v494_v24  ;;  %456 = vmatprep.subr.bf16.mxu1 %v590_v4 }
  0x3b   :  { %287 = vmatprep.subr.bf16.mxu0 %v496_v26 }
  0x3d   :  { %457 = vmatpush3.bf16.msra.mxu1 %v499_v28 }
  0x3e   :  { %288 = vmatpush1.bf16.msra.mxu0 %v498_v27  ;;  %458 = vmatprep.subr.bf16.mxu1 %v590_v4 }
  0x3f   :  { %289 = vmatprep.subr.bf16.mxu0 %v500_v29 }
  0x41   :  { %459 = vmatpush3.bf16.msra.mxu1 %v503_v32 }
  0x42   :  { %290 = vmatpush1.bf16.msra.mxu0 %v502_v31  ;;  %460 = vmatprep.subr.bf16.mxu1 %v590_v4 }
  0x43   :  { %291 = vmatprep.subr.bf16.mxu0 %v504_v33 }
  0x45   :  { %461 = vmatpush3.bf16.msra.mxu1 %v507_v35 }
  0x46   :  { %292 = vmatpush1.bf16.msra.mxu0 %v506_v34 }
  0xb5   :  { %v57_v7 = vpop.xlane.xlu0 %56 }
  0xb6   :  { %v61_v8 = vmul.f32 0.0078125, %v57_v7 }
  0xb8   :  { %v653_v9 = vsub.f32 %v54_v0, %v61_v8 }
  0xb9   :  { %v59_v10 = vpop.xlane.xlu0 %58 }
  0xba   :  { %v62_v11 = vmul.f32 0.0078125, %v59_v10  ;;  %v65_v12 = vmul.f32 %v653_v9, %v653_v9 }
  0xbc   :  { %v657_v13 = vsub.f32 %v55_v1, %v62_v11  ;;  %67 = vadd.xlane.f32.xlu1 %v65_v12 }
  0xbe   :  { %v66_v14 = vmul.f32 %v657_v13, %v657_v13 }
  0xc0   :  { %69 = vadd.xlane.f32.xlu1 %v66_v14 }
 0x149   :  { %v68_v36 = vpop.xlane.xlu1 %67 }
 0x14a   :  { %v71_v37 = vmul.f32 0.0078125, %v68_v36 }
 0x14c   :  { %v73_v38 = vadd.f32 1e-05, %v71_v37 }
 0x14d   :  { %v70_v39 = vpop.xlane.xlu1 %69 }
 0x14e   :  { %508 = vrsqrt.f32 %v73_v38  ;;  %v72_v40 = vmul.f32 0.0078125, %v70_v39 }
 0x150   :  { %v74_v41 = vadd.f32 1e-05, %v72_v40 }
 0x152   :  { %510 = vrsqrt.f32 %v74_v41 }
 0x158   :  { %v509_v42 = vpop.eup %508 }
 0x159   :  { %v77_v43 = vmul.f32 %v509_v42, %v653_v9 }
 0x15b   :  { %v86_v47 = vmul.f32 %v403_v44, %v77_v43 }
 0x15c   :  { %v511_v45 = vpop.eup %510 }
 0x15d   :  { %v78_v46 = vmul.f32 %v511_v45, %v657_v13  ;;  %v95_v50 = vadd.f32 %v404_v48, %v86_v47 }
 0x15f   :  { %v87_v49 = vmul.f32 %v403_v44, %v78_v46 }
 0x161   :  { %v96_v51 = vadd.f32 %v404_v48, %v87_v49 }
 0x163   :  { %v97_v52 = vpack.c.bf16 %v96_v51, %v95_v50 }
 0x165   :  { %310 = vmatmul.mubr.bf16.vlgmr.msra.gmra.mrb[0].mxu0 %v97_v52  ;;  %463 = vmatmul.mubr.bf16.vlgmr.msra.gmra.mrb[0].mxu1 %v97_v52 }
 0x238   :  { %v311_v62 = vpop.f32.mrb[0].mxu0  ;;  %v354_v63 = vpop.f32.mrb[0].mxu1 }
 0x239   :  { %v312_v0 = vadd.f32 %v311_v62, %v137_v59  ;;  %v355_v1 = vadd.f32 %v354_v63, %v145_v60  ;;  %v313_v2 = vpop.f32.mrb[1].mxu0  ;;  %v464_v3 = vpop.f32.mrb[1].mxu1 }
 0x23a   :  { %v314_v4 = vadd.f32 %v313_v2, %v141_v61  ;;  %v315_v5 = vpop.f32.mrb[2].mxu0  ;;  %v357_v6 = vpop.f32.mrb[2].mxu1 }
 0x23b   :  { %v434_v7 = vpack.c.bf16 %v355_v1, %v355_v1  ;;  %v316_v8 = vadd.f32 %v315_v5, %v137_v59  ;;  %v358_v9 = vadd.f32 %v357_v6, %v145_v60  ;;  %v317_v10 = vpop.f32.mrb[3].mxu0  ;;  %v465_v11 = vpop.f32.mrb[3].mxu1 }
 0x23c   :  { %v433_v12 = vpack.c.bf16 %v314_v4, %v312_v0  ;;  %v318_v13 = vadd.f32 %v317_v10, %v141_v61 }
 0x23d   :  { %382 = vst [vmem:[#allocation8 + $0x8] sm:$0xf] %v434_v7  ;;  %v436_v14 = vpack.c.bf16 %v358_v9, %v358_v9 }
 0x23e   :  { %381 = vst [vmem:[#allocation8] sm:$0xff] %v433_v12  ;;  %v435_v15 = vpack.c.bf16 %v318_v13, %v316_v8 }
 0x23f   :  { %384 = vst [vmem:[#allocation8 + $0x14] sm:$0xf] %v436_v14 }
 0x240   :  { %383 = vst [vmem:[#allocation8 + $0xc] sm:$0xff] %v435_v15 }
 0x241   :  { %567 = shalt.err (!%p564_p6)
}
 0x242   :  { %s568_s27 = scalar_lea.hbm %s699_s5, 384 }
 0x243   :  { %p569_p7 = scmp.ne.s32.totalorder %s699_s5, %s568_s27  ;;  %p572_p8 = scmp.lt.u32.totalorder %s568_s27, %s699_s5 }
 0x245   :  { %p574_p9 = pnand %p572_p8, %p569_p7 }
 0x247   :  { %577 = shalt.err (!%p574_p9)
}
 0x248   :  { %396 = dma.vmem_to_hbm [thread:$0]  %s391_s4, 384, %s699_s5, [#allocation5], %s588_s0, %s588_s0, %s589_s17  }
 0x249   :  { %582 = dma.done.wait [#allocation5], 384  }
 0x24a   :  { %583 = vsyncadd [#allocation5], 4294966912 }
 0x24b   :  { %400 = vsyncpa [#allocation4], 1 }
 0x24c   :  { %401 = vsyncpa [#allocation7], 1 }
 0x24d   :  { %402 = vsyncpa [#allocation5], 1 }

</bundles_post_ra>
